<compile_context>
chip_gen: v7x
topology: tpu7x:2x2x1
jax: 0.10.0
libtpu: 0.0.40
codegen_flags: <defaults>
</compile_context>

<pallas_src>
import functools
import math

import numpy as np
import jax
import jax.numpy as jnp
from jax import lax
from jax.experimental import pallas as pl
from jax.experimental.pallas import tpu as pltpu


def _f1_loss_kernel(yt_ref, yp_ref, fold_ref, out_ref,
                    tp_acc, syt_acc, syp_acc, bce_acc,
                    *, n_samples, n_classes, n_rows, tile_r, lane_w,
                    epsilon, has_partial):
    i = pl.program_id(0)
    last = pl.num_programs(0) - 1

    @pl.when(i == 0)
    def _init():
        tp_acc[...] = jnp.zeros_like(tp_acc)
        syt_acc[...] = jnp.zeros_like(syt_acc)
        syp_acc[...] = jnp.zeros_like(syp_acc)
        bce_acc[...] = jnp.zeros_like(bce_acc)

    def _accumulate(masked):
        yt = yt_ref[...].astype(jnp.float32)        # (tile_r, lane_w)
        yp = yp_ref[...].astype(jnp.float32)
        if masked:
            # Only the single ragged final grid step takes this path: zero the
            # rows that hang off the end of the (padded) array.  A (0, 0) pair
            # contributes exactly 0 to tp, the column sums and the BCE sum.
            row = lax.broadcasted_iota(jnp.int32, yt.shape, 0)
            valid = (i * tile_r + row) < n_rows
            yt = jnp.where(valid, yt, 0.0)
            yp = jnp.where(valid, yp, 0.0)

        # Per-lane partials: reduce only the sublane (row) axis each step; the
        # cross-lane reduction + per-class fold happen once at finalize.
        tp_acc[...] += jnp.sum(yt * yp, axis=0, keepdims=True)
        syt_acc[...] += jnp.sum(yt, axis=0, keepdims=True)
        syp_acc[...] += jnp.sum(yp, axis=0, keepdims=True)

        # BCE(input=y_true, target=y_pred) with PyTorch's -100 log clamp:
        # yp*log(yt) + (1-yp)*log(1-yt) == yp*(log(yt)-log(1-yt)) + log(1-yt).
        log_yt = jnp.maximum(jnp.log(yt), jnp.float32(-100.0))
        log_1m = jnp.maximum(jnp.log(1.0 - yt), jnp.float32(-100.0))
        bce_acc[...] += jnp.sum(yp * (log_yt - log_1m) + log_1m,
                                axis=0, keepdims=True)

    if not has_partial:
        _accumulate(masked=False)
    else:
        @pl.when(i < last)
        def _full_tiles():
            _accumulate(masked=False)

        @pl.when(i == last)
        def _ragged_tile():
            _accumulate(masked=True)

    @pl.when(i == last)
    def _finalize():
        eps = jnp.float32(epsilon)
        fold = fold_ref[...]                        # (W, W): 1 iff same class
        # Per-class totals, replicated to every lane of that class:
        #   out[k] = sum_{k'} acc[k'] * [k' % C == k % C]   (one tiny MXU op).
        tp = jnp.dot(tp_acc[...], fold, preferred_element_type=jnp.float32)
        syt = jnp.dot(syt_acc[...], fold, preferred_element_type=jnp.float32)
        syp = jnp.dot(syp_acc[...], fold, preferred_element_type=jnp.float32)
        fp = syp - tp                               # = sum((1 - yt) * yp)
        fn = syt - tp                               # = sum(yt * (1 - yp))
        p = tp / (tp + fp + eps)
        r = tp / (tp + fn + eps)
        f1 = 2.0 * p * r / (p + r + eps)
        f1 = jnp.where(jnp.isnan(f1), jnp.zeros_like(f1), f1)
        # Every class is replicated lane_w // C times -> lane mean == class mean.
        f1_mean = jnp.sum(f1) / jnp.float32(lane_w)
        bce = -jnp.sum(bce_acc[...]) / jnp.float32(n_samples * n_classes)
        out_ref[0, 0] = jnp.float32(1.0) - f1_mean + jnp.float32(0.01) * bce


def f1_loss(y_true, y_pred, epsilon=1e-07, target_tile_bytes=4 << 20):
    if y_true.shape != y_pred.shape or y_true.ndim != 2:
        raise ValueError("expected matching 2-D (batch, classes) inputs")
    n, c = y_true.shape

    # Lane width: smallest multiple of 128 that is also a multiple of C, so the
    # zero-copy reshape of the row-major (N, C) array maps lane k -> class k%C.
    lane_w = 128 * c // math.gcd(c, 128)
    total = n * c
    n_rows = -(-total // lane_w)                    # cdiv
    pad = n_rows * lane_w - total

    yt = y_true.reshape(-1)                         # free (bitcast) reshape
    yp = y_pred.reshape(-1)
    if pad:
        # Only when N*C is not a multiple of lane_w; padded zeros contribute 0.
        yt = jnp.pad(yt, (0, pad))
        yp = jnp.pad(yp, (0, pad))
    yt = yt.reshape(n_rows, lane_w)
    yp = yp.reshape(n_rows, lane_w)

    itemsize = jnp.dtype(yt.dtype).itemsize
    # Keep tile rows a multiple of the dtype's sublane tile (no hidden padding).
    sub = {4: 8, 2: 16, 1: 32}.get(itemsize, 8)
    # ~4 MiB per input tile; 2 inputs x 2 pipeline buffers ~= 16 MiB VMEM.
    tile_r = max(sub, (target_tile_bytes // (lane_w * itemsize)) // sub * sub)
    if tile_r >= n_rows:
        tile_r = n_rows                             # single block (full-dim rule)
    grid = (pl.cdiv(n_rows, tile_r),)
    has_partial = (n_rows % tile_r) != 0

    # Constant per-class fold matrix (fetched into VMEM exactly once).
    lane_cls = np.arange(lane_w) % c
    fold = jnp.asarray(np.equal.outer(lane_cls, lane_cls).astype(np.float32))

    kernel = functools.partial(
        _f1_loss_kernel,
        n_samples=n, n_classes=c, n_rows=n_rows, tile_r=tile_r,
        lane_w=lane_w, epsilon=epsilon, has_partial=has_partial)

    out = pl.pallas_call(
        kernel,
        out_shape=jax.ShapeDtypeStruct((1, 1), jnp.float32),
        grid=grid,
        in_specs=[
            pl.BlockSpec((tile_r, lane_w), lambda i: (i, 0)),
            pl.BlockSpec((tile_r, lane_w), lambda i: (i, 0)),
            pl.BlockSpec((lane_w, lane_w), lambda i: (0, 0)),   # constant block
        ],
        out_specs=pl.BlockSpec(memory_space=pltpu.SMEM),
        scratch_shapes=[
            pltpu.VMEM((1, lane_w), jnp.float32),   # tp per-lane partial
            pltpu.VMEM((1, lane_w), jnp.float32),   # sum(y_true) per-lane partial
            pltpu.VMEM((1, lane_w), jnp.float32),   # sum(y_pred) per-lane partial
            pltpu.VMEM((1, lane_w), jnp.float32),   # BCE per-lane partial sum
        ],
        compiler_params=pltpu.CompilerParams(
            dimension_semantics=("arbitrary",),
            vmem_limit_bytes=32 * 1024 * 1024),
        cost_estimate=pl.CostEstimate(
            flops=12 * total,
            transcendentals=2 * total,
            bytes_accessed=2 * total * itemsize + lane_w * lane_w * 4 + 4),
    )(yt, yp, fold)
    return out[0, 0]


def f1_loss_ref(y_true, y_pred, epsilon=1e-07):
    # Pure-JAX reference mirroring the PyTorch forward.
    y_true = y_true.astype(jnp.float32)
    y_pred = y_pred.astype(jnp.float32)
    tp = (y_true * y_pred).sum(axis=0)
    fp = ((1 - y_true) * y_pred).sum(axis=0)
    fn = (y_true * (1 - y_pred)).sum(axis=0)
    p = tp / (tp + fp + epsilon)
    r = tp / (tp + fn + epsilon)
    f1 = 2 * p * r / (p + r + epsilon)
    f1 = jnp.where(jnp.isnan(f1), jnp.zeros_like(f1), f1)
    log_yt = jnp.maximum(jnp.log(y_true), -100.0)
    log_1m = jnp.maximum(jnp.log(1 - y_true), -100.0)
    bce = -jnp.mean(y_pred * log_yt + (1 - y_pred) * log_1m)
    return 1 - f1.mean() + 0.01 * bce


if __name__ == "__main__":
    key = jax.random.PRNGKey(0)
    k1, k2, k3, k4, k5, k6 = jax.random.split(key, 6)

    # Case 1: small shape matching the module's usage (batch=16, classes=8);
    # 16*8 = 128 elements -> one (1, 128) row, no padding, single block.
    y_true = jax.nn.sigmoid(jax.random.normal(k1, (16, 8), dtype=jnp.float32))
    y_pred = jax.nn.sigmoid(jax.random.normal(k2, (16, 8), dtype=jnp.float32))
    out = jax.block_until_ready(f1_loss(y_true, y_pred))
    ref = f1_loss_ref(y_true, y_pred)
    assert jnp.allclose(out, ref, rtol=1e-5, atol=1e-5), (out, ref)

    # Case 2: multi-step grid, no remainder (1024*8 = 64 rows, tiny 8-row tiles
    # -> 8 full grid steps exercising the accumulator init/finalize path).
    y_true2 = jax.nn.sigmoid(jax.random.normal(k3, (1024, 8), dtype=jnp.float32))
    y_pred2 = jax.nn.sigmoid(jax.random.normal(k4, (1024, 8), dtype=jnp.float32))
    out2 = jax.block_until_ready(
        f1_loss(y_true2, y_pred2, target_tile_bytes=4096))
    ref2 = f1_loss_ref(y_true2, y_pred2)
    assert jnp.allclose(out2, ref2, rtol=1e-5, atol=1e-5), (out2, ref2)

    # Case 3: awkward batch (1000*8 = 8000 -> zero-padded to 63 rows, ragged
    # grid with a masked final step).
    y_true3 = jax.nn.sigmoid(jax.random.normal(k5, (1000, 8), dtype=jnp.float32))
    y_pred3 = jax.nn.sigmoid(jax.random.normal(k6, (1000, 8), dtype=jnp.float32))
    out3 = jax.block_until_ready(
        f1_loss(y_true3, y_pred3, target_tile_bytes=4096))
    ref3 = f1_loss_ref(y_true3, y_pred3)
    assert jnp.allclose(out3, ref3, rtol=1e-5, atol=1e-5), (out3, ref3)

    print("KERNEL_OK")
</pallas_src>

<mosaic_0001>
module attributes {stable_mosaic.version = 11 : i64} {
  func.func @_f1_loss_kernel(%arg0: i32, %arg1: memref<1x128xf32, #tpu.memory_space<vmem>>, %arg2: memref<1x128xf32, #tpu.memory_space<vmem>>, %arg3: memref<128x128xf32, #tpu.memory_space<vmem>>, %arg4: memref<1x1xf32, #tpu.memory_space<smem>>, %arg5: memref<1x128xf32, #tpu.memory_space<vmem>>, %arg6: memref<1x128xf32, #tpu.memory_space<vmem>>, %arg7: memref<1x128xf32, #tpu.memory_space<vmem>>, %arg8: memref<1x128xf32, #tpu.memory_space<vmem>>) attributes {dimension_semantics = [#tpu.dimension_semantics<arbitrary>], iteration_bounds = array<i64: 1>, scalar_prefetch = 0 : i64, scratch_operands = 4 : i64, tpu.core_type = #tpu.core_type<tc>, window_params = [{transform_indices = @transform_0, window_bounds = array<i64: 1, 128>}, {transform_indices = @transform_1, window_bounds = array<i64: 1, 128>}, {pipeline_mode = #tpu.pipeline_mode<synchronous>, transform_indices = @transform_2, window_bounds = array<i64: 128, 128>}, {transform_indices = @transform_3, window_bounds = array<i64: 1, 1>}]} {
    %c0_i32 = arith.constant 0 : i32
    %0 = arith.cmpi eq, %arg0, %c0_i32 : i32
    %1 = arith.extui %0 : i1 to i32
    %c0_i32_0 = arith.constant 0 : i32
    %2 = arith.cmpi ne, %1, %c0_i32_0 : i32
    scf.if %2 {
      %cst_28 = arith.constant 0.000000e+00 : f32
      %40 = vector.broadcast %cst_28 : f32 to vector<1x128xf32>
      %c0_29 = arith.constant 0 : index
      %c0_30 = arith.constant 0 : index
      %41 = vector.load %arg5[%c0_29, %c0_30] : memref<1x128xf32, #tpu.memory_space<vmem>>, vector<1x128xf32>
      tpu.vector_store %arg5[%c0_29, %c0_30], %40 {strides = array<i32>} : memref<1x128xf32, #tpu.memory_space<vmem>>, vector<1x128xf32>,
      %cst_31 = arith.constant 0.000000e+00 : f32
      %42 = vector.broadcast %cst_31 : f32 to vector<1x128xf32>
      %c0_32 = arith.constant 0 : index
      %c0_33 = arith.constant 0 : index
      %43 = vector.load %arg6[%c0_32, %c0_33] : memref<1x128xf32, #tpu.memory_space<vmem>>, vector<1x128xf32>
      tpu.vector_store %arg6[%c0_32, %c0_33], %42 {strides = array<i32>} : memref<1x128xf32, #tpu.memory_space<vmem>>, vector<1x128xf32>,
      %cst_34 = arith.constant 0.000000e+00 : f32
      %44 = vector.broadcast %cst_34 : f32 to vector<1x128xf32>
      %c0_35 = arith.constant 0 : index
      %c0_36 = arith.constant 0 : index
      %45 = vector.load %arg7[%c0_35, %c0_36] : memref<1x128xf32, #tpu.memory_space<vmem>>, vector<1x128xf32>
      tpu.vector_store %arg7[%c0_35, %c0_36], %44 {strides = array<i32>} : memref<1x128xf32, #tpu.memory_space<vmem>>, vector<1x128xf32>,
      %cst_37 = arith.constant 0.000000e+00 : f32
      %46 = vector.broadcast %cst_37 : f32 to vector<1x128xf32>
      %c0_38 = arith.constant 0 : index
      %c0_39 = arith.constant 0 : index
      %47 = vector.load %arg8[%c0_38, %c0_39] : memref<1x128xf32, #tpu.memory_space<vmem>>, vector<1x128xf32>
      tpu.vector_store %arg8[%c0_38, %c0_39], %46 {strides = array<i32>} : memref<1x128xf32, #tpu.memory_space<vmem>>, vector<1x128xf32>,
    } else {
    }
    %c0 = arith.constant 0 : index
    %c0_1 = arith.constant 0 : index
    %3 = vector.load %arg1[%c0, %c0_1] : memref<1x128xf32, #tpu.memory_space<vmem>>, vector<1x128xf32>
    %c0_2 = arith.constant 0 : index
    %c0_3 = arith.constant 0 : index
    %4 = vector.load %arg2[%c0_2, %c0_3] : memref<1x128xf32, #tpu.memory_space<vmem>>, vector<1x128xf32>
    %c0_4 = arith.constant 0 : index
    %c0_5 = arith.constant 0 : index
    %5 = vector.load %arg5[%c0_4, %c0_5] : memref<1x128xf32, #tpu.memory_space<vmem>>, vector<1x128xf32>
    %6 = arith.mulf %3, %4 : vector<1x128xf32>
    %cst = arith.constant dense<0.000000e+00> : vector<128xf32>
    %7 = vector.multi_reduction <add>, %6, %cst [0] : vector<1x128xf32> to vector<128xf32>
    %8 = vector.shape_cast %7 : vector<128xf32> to vector<1x128xf32>
    %9 = arith.addf %5, %8 : vector<1x128xf32>
    %c0_6 = arith.constant 0 : index
    %c0_7 = arith.constant 0 : index
    %10 = vector.load %arg5[%c0_6, %c0_7] : memref<1x128xf32, #tpu.memory_space<vmem>>, vector<1x128xf32>
    tpu.vector_store %arg5[%c0_6, %c0_7], %9 {strides = array<i32>} : memref<1x128xf32, #tpu.memory_space<vmem>>, vector<1x128xf32>,
    %c0_8 = arith.constant 0 : index
    %c0_9 = arith.constant 0 : index
    %11 = vector.load %arg6[%c0_8, %c0_9] : memref<1x128xf32, #tpu.memory_space<vmem>>, vector<1x128xf32>
    %cst_10 = arith.constant dense<0.000000e+00> : vector<128xf32>
    %12 = vector.multi_reduction <add>, %3, %cst_10 [0] : vector<1x128xf32> to vector<128xf32>
    %13 = vector.shape_cast %12 : vector<128xf32> to vector<1x128xf32>
    %14 = arith.addf %11, %13 : vector<1x128xf32>
    %c0_11 = arith.constant 0 : index
    %c0_12 = arith.constant 0 : index
    %15 = vector.load %arg6[%c0_11, %c0_12] : memref<1x128xf32, #tpu.memory_space<vmem>>, vector<1x128xf32>
    tpu.vector_store %arg6[%c0_11, %c0_12], %14 {strides = array<i32>} : memref<1x128xf32, #tpu.memory_space<vmem>>, vector<1x128xf32>,
    %c0_13 = arith.constant 0 : index
    %c0_14 = arith.constant 0 : index
    %16 = vector.load %arg7[%c0_13, %c0_14] : memref<1x128xf32, #tpu.memory_space<vmem>>, vector<1x128xf32>
    %cst_15 = arith.constant dense<0.000000e+00> : vector<128xf32>
    %17 = vector.multi_reduction <add>, %4, %cst_15 [0] : vector<1x128xf32> to vector<128xf32>
    %18 = vector.shape_cast %17 : vector<128xf32> to vector<1x128xf32>
    %19 = arith.addf %16, %18 : vector<1x128xf32>
    %c0_16 = arith.constant 0 : index
    %c0_17 = arith.constant 0 : index
    %20 = vector.load %arg7[%c0_16, %c0_17] : memref<1x128xf32, #tpu.memory_space<vmem>>, vector<1x128xf32>
    tpu.vector_store %arg7[%c0_16, %c0_17], %19 {strides = array<i32>} : memref<1x128xf32, #tpu.memory_space<vmem>>, vector<1x128xf32>,
    %21 = math.log %3 : vector<1x128xf32>
    %cst_18 = arith.constant -1.000000e+02 : f32
    %22 = vector.broadcast %cst_18 : f32 to vector<1x128xf32>
    %23 = arith.maximumf %21, %22 : vector<1x128xf32>
    %cst_19 = arith.constant 1.000000e+00 : f32
    %24 = vector.broadcast %cst_19 : f32 to vector<1x128xf32>
    %25 = arith.subf %24, %3 : vector<1x128xf32>
    %26 = math.log %25 : vector<1x128xf32>
    %cst_20 = arith.constant -1.000000e+02 : f32
    %27 = vector.broadcast %cst_20 : f32 to vector<1x128xf32>
    %28 = arith.maximumf %26, %27 : vector<1x128xf32>
    %c0_21 = arith.constant 0 : index
    %c0_22 = arith.constant 0 : index
    %29 = vector.load %arg8[%c0_21, %c0_22] : memref<1x128xf32, #tpu.memory_space<vmem>>, vector<1x128xf32>
    %30 = arith.subf %23, %28 : vector<1x128xf32>
    %31 = arith.mulf %4, %30 : vector<1x128xf32>
    %32 = arith.addf %31, %28 : vector<1x128xf32>
    %cst_23 = arith.constant dense<0.000000e+00> : vector<128xf32>
    %33 = vector.multi_reduction <add>, %32, %cst_23 [0] : vector<1x128xf32> to vector<128xf32>
    %34 = vector.shape_cast %33 : vector<128xf32> to vector<1x128xf32>
    %35 = arith.addf %29, %34 : vector<1x128xf32>
    %c0_24 = arith.constant 0 : index
    %c0_25 = arith.constant 0 : index
    %36 = vector.load %arg8[%c0_24, %c0_25] : memref<1x128xf32, #tpu.memory_space<vmem>>, vector<1x128xf32>
    tpu.vector_store %arg8[%c0_24, %c0_25], %35 {strides = array<i32>} : memref<1x128xf32, #tpu.memory_space<vmem>>, vector<1x128xf32>,
    %c0_i32_26 = arith.constant 0 : i32
    %37 = arith.cmpi eq, %arg0, %c0_i32_26 : i32
    %38 = arith.extui %37 : i1 to i32
    %c0_i32_27 = arith.constant 0 : i32
    %39 = arith.cmpi ne, %38, %c0_i32_27 : i32
    scf.if %39 {
      %c0_28 = arith.constant 0 : index
      %c0_29 = arith.constant 0 : index
      %40 = vector.load %arg3[%c0_28, %c0_29] : memref<128x128xf32, #tpu.memory_space<vmem>>, vector<128x128xf32>
      %c0_30 = arith.constant 0 : index
      %c0_31 = arith.constant 0 : index
      %41 = vector.load %arg5[%c0_30, %c0_31] : memref<1x128xf32, #tpu.memory_space<vmem>>, vector<1x128xf32>
      %cst_32 = arith.constant dense<0.000000e+00> : vector<1x128xf32>
      %42 = tpu.matmul %41, %40, %cst_32 {dimension_numbers = #tpu.dot_dimension_numbers<[1], [0], [0], [1], [0, 0, 1, 1], [], []>} : vector<1x128xf32>, vector<128x128xf32>, vector<1x128xf32> -> vector<1x128xf32>
      %c0_33 = arith.constant 0 : index
      %c0_34 = arith.constant 0 : index
      %43 = vector.load %arg6[%c0_33, %c0_34] : memref<1x128xf32, #tpu.memory_space<vmem>>, vector<1x128xf32>
      %cst_35 = arith.constant dense<0.000000e+00> : vector<1x128xf32>
      %44 = tpu.matmul %43, %40, %cst_35 {dimension_numbers = #tpu.dot_dimension_numbers<[1], [0], [0], [1], [0, 0, 1, 1], [], []>} : vector<1x128xf32>, vector<128x128xf32>, vector<1x128xf32> -> vector<1x128xf32>
      %c0_36 = arith.constant 0 : index
      %c0_37 = arith.constant 0 : index
      %45 = vector.load %arg7[%c0_36, %c0_37] : memref<1x128xf32, #tpu.memory_space<vmem>>, vector<1x128xf32>
      %cst_38 = arith.constant dense<0.000000e+00> : vector<1x128xf32>
      %46 = tpu.matmul %45, %40, %cst_38 {dimension_numbers = #tpu.dot_dimension_numbers<[1], [0], [0], [1], [0, 0, 1, 1], [], []>} : vector<1x128xf32>, vector<128x128xf32>, vector<1x128xf32> -> vector<1x128xf32>
      %47 = arith.subf %46, %42 : vector<1x128xf32>
      %48 = arith.subf %44, %42 : vector<1x128xf32>
      %49 = arith.addf %42, %47 : vector<1x128xf32>
      %cst_39 = arith.constant 1.000000e-07 : f32
      %50 = vector.broadcast %cst_39 : f32 to vector<1x128xf32>
      %51 = arith.addf %49, %50 : vector<1x128xf32>
      %52 = arith.divf %42, %51 : vector<1x128xf32>
      %53 = arith.addf %42, %48 : vector<1x128xf32>
      %cst_40 = arith.constant 1.000000e-07 : f32
      %54 = vector.broadcast %cst_40 : f32 to vector<1x128xf32>
      %55 = arith.addf %53, %54 : vector<1x128xf32>
      %56 = arith.divf %42, %55 : vector<1x128xf32>
      %cst_41 = arith.constant 2.000000e+00 : f32
      %57 = vector.broadcast %cst_41 : f32 to vector<1x128xf32>
      %58 = arith.mulf %57, %52 : vector<1x128xf32>
      %59 = arith.mulf %58, %56 : vector<1x128xf32>
      %60 = arith.addf %52, %56 : vector<1x128xf32>
      %cst_42 = arith.constant 1.000000e-07 : f32
      %61 = vector.broadcast %cst_42 : f32 to vector<1x128xf32>
      %62 = arith.addf %60, %61 : vector<1x128xf32>
      %63 = arith.divf %59, %62 : vector<1x128xf32>
      %64 = arith.cmpf one, %63, %63 : vector<1x128xf32>
      %cst_43 = arith.constant 0.000000e+00 : f32
      %65 = vector.broadcast %cst_43 : f32 to vector<1x128xf32>
      %66 = arith.select %64, %65, %63 : vector<1x128xi1>, vector<1x128xf32>
      %67 = vector.shape_cast %66 : vector<1x128xf32> to vector<1x1x128xf32>
      %cst_44 = arith.constant dense<0.000000e+00> : vector<1xf32>
      %68 = vector.multi_reduction <add>, %67, %cst_44 [1, 2] : vector<1x1x128xf32> to vector<1xf32>
      %69 = vector.shape_cast %68 : vector<1xf32> to vector<1x1x1xf32>
      %70 = vector.extract %69[0, 0, 0] : f32 from vector<1x1x1xf32>
      %cst_45 = arith.constant 1.280000e+02 : f32
      %71 = arith.divf %70, %cst_45 : f32
      %c0_46 = arith.constant 0 : index
      %c0_47 = arith.constant 0 : index
      %72 = vector.load %arg8[%c0_46, %c0_47] : memref<1x128xf32, #tpu.memory_space<vmem>>, vector<1x128xf32>
      %73 = vector.shape_cast %72 : vector<1x128xf32> to vector<1x1x128xf32>
      %cst_48 = arith.constant dense<0.000000e+00> : vector<1xf32>
      %74 = vector.multi_reduction <add>, %73, %cst_48 [1, 2] : vector<1x1x128xf32> to vector<1xf32>
      %75 = vector.shape_cast %74 : vector<1xf32> to vector<1x1x1xf32>
      %76 = vector.extract %75[0, 0, 0] : f32 from vector<1x1x1xf32>
      %cst_49 = arith.constant 0.000000e+00 : f32
      %77 = arith.subf %cst_49, %76 : f32
      %cst_50 = arith.constant 1.280000e+02 : f32
      %78 = arith.divf %77, %cst_50 : f32
      %cst_51 = arith.constant 1.000000e+00 : f32
      %79 = arith.subf %cst_51, %71 : f32
      %cst_52 = arith.constant 0.00999999977 : f32
      %80 = arith.mulf %cst_52, %78 : f32
      %81 = arith.addf %79, %80 : f32
      %c0_53 = arith.constant 0 : index
      %c0_54 = arith.constant 0 : index
      %82 = memref.load %arg4[%c0_53, %c0_54] : memref<1x1xf32, #tpu.memory_space<smem>>
      memref.store %81, %arg4[%c0_53, %c0_54] : memref<1x1xf32, #tpu.memory_space<smem>>
    } else {
    }
    return
  }
  func.func @transform_0(%arg0: i32) -> (i32, i32) {
    %c0_i32 = arith.constant 0 : i32
    %c0_i32_0 = arith.constant 0 : i32
    return %arg0, %c0_i32 : i32, i32
  }
  func.func @transform_1(%arg0: i32) -> (i32, i32) {
    %c0_i32 = arith.constant 0 : i32
    %c0_i32_0 = arith.constant 0 : i32
    return %arg0, %c0_i32 : i32, i32
  }
  func.func @transform_2(%arg0: i32) -> (i32, i32) {
    %c0_i32 = arith.constant 0 : i32
    %c0_i32_0 = arith.constant 0 : i32
    %c0_i32_1 = arith.constant 0 : i32
    return %c0_i32, %c0_i32_0 : i32, i32
  }
  func.func @transform_3(%arg0: i32) -> (i32, i32) {
    %c0_i32 = arith.constant 0 : i32
    %c0_i32_0 = arith.constant 0 : i32
    %c0_i32_1 = arith.constant 0 : i32
    return %c0_i32, %c0_i32_0 : i32, i32
  }
}

</mosaic_0001>

<bundles_post_ra>
// kernel: tpu_custom_call.1
= control target key start
LH: loop header
LB: loop body
LE: loop exit
PB: predicated region body
PF: predicated region fallthrough
CT: control target
= control target key end

     0   :  { %8 = vsyncpa [#allocation7], 0  ;;  %s810_s0 = inlined_call_operand.hbm [shape: f32[1,128], index: 0, kind: input, shape index: {}]   ;;  %s811_s1 = inlined_call_operand.vmem [shape: f32[1,128], index: 1, kind: input, shape index: {}]   ;;  %s812_s2 = inlined_call_operand.hbm [shape: f32[128,128], index: 2, kind: input, shape index: {}]   ;;  %s813_s3 = inlined_call_operand.hbm [shape: f32[1,1], index: 3, kind: output, shape index: {}]  }
   0x1   :  { %9 = vsyncpa [#allocation10], 0 }
   0x2   :  { %10 = vsyncpa [#allocation8], 0  ;;  %s687_s12 = smov [#allocation6]   ;;  %s688_s14 = smov [#allocation9]  }
   0x3   :  { %s17_s13 = sshll.u32 %s687_s12, 4  ;;  %s28_s15 = sshll.u32 %s688_s14, 4  ;;  %s18_s13 = int_to_ptr.vmem [resolvable:$true] %s17_s13  ;;  %s715_s15 = int_to_ptr.vmem [resolvable:$true] %s28_s15 }
   0x4   :  { %s627_s18 = scalar_lea.hbm %s810_s0, 16 }
   0x5   :  { %p628_p0 = scmp.ne.s32.totalorder %s810_s0, %s627_s18  ;;  %p631_p1 = scmp.lt.u32.totalorder %s627_s18, %s810_s0 }
   0x7   :  { %p633_p2 = pnand %p631_p1, %p628_p0 }
   0x9   :  { %636 = shalt.err (!%p633_p2)
}
   0xa   :  { %s637_s23 = scalar_lea.vmem %s18_s13, 16  ;;  %s641_s24 = scalar_lea.vmem %s18_s13, 32 }
   0xb   :  { %p638_p3 = scmp.ne.s32.totalorder %s18_s13, %s637_s23  ;;  %p642_p4 = scmp.lt.s32.totalorder %s18_s13, %s18_s13 }
   0xc   :  { %p643_p5 = scmp.lt.s32.totalorder %s641_s24, %s637_s23 }
   0xe   :  { %p644_p6 = por %p643_p5, %p642_p4 }
  0x10   :  { %p645_p7 = pnand %p644_p6, %p638_p3 }
  0x12   :  { %648 = shalt.err (!%p645_p7)
}
  0x13   :  { %20 = dma.hbm_to_vmem [thread:$0]  %s810_s0, 16, %s18_s13, [#allocation7]  }
  0x14   :  { %s649_s29 = scalar_lea.hbm %s812_s2, 2048 }
  0x15   :  { %p650_p8 = scmp.ne.s32.totalorder %s812_s2, %s649_s29  ;;  %p653_p9 = scmp.lt.u32.totalorder %s649_s29, %s812_s2 }
  0x17   :  { %p655_p10 = pnand %p653_p9, %p650_p8 }
  0x19   :  { %658 = shalt.err (!%p655_p10)
}
  0x1a   :  { %s659_s7 = scalar_lea.vmem %s715_s15, 2048  ;;  %p664_p12 = scmp.lt.s32.totalorder %s715_s15, %s715_s15 }
  0x1b   :  { %p660_p11 = scmp.ne.s32.totalorder %s715_s15, %s659_s7  ;;  %p665_p13 = scmp.lt.s32.totalorder %s659_s7, %s659_s7 }
  0x1d   :  { %p666_p0 = por %p665_p13, %p664_p12 }
  0x1f   :  { %p667_p1 = pnand %p666_p0, %p660_p11 }
  0x21   :  { %670 = shalt.err (!%p667_p1)
}
  0x22   :  { %s689_s0 = smov 128   ;;  %s690_s8 = smov 8  }
  0x23   :  { %34 = dma.hbm_to_vmem [thread:$0]  %s812_s2, 2048, %s715_s15, [#allocation10], %s689_s0, %s689_s0, %s690_s8  }
  0x24   :  { %681 = dma.done.wait [#allocation7], 16  }
  0x25   :  { %682 = vsyncadd [#allocation7], 4294967280 }
  0x26   :  { %683 = dma.done.wait [#allocation10], 2048  }
  0x27   :  { %684 = vsyncadd [#allocation10], 4294965248  ;;  %v691_v0 = vmov 0.0|0.0   ;;  %v692_v1 = vmov 0.0   ;;  %vm693_vm0 = vmmov 0   ;;  %v81_v2 = vld [vmem:[#allocation9] sm:$0xff] }
  0x28   :  { %533 = vmatprep.subr.bf16.mxu0 %v691_v0  ;;  %557 = vmatprep.subr.bf16.mxu1 %v691_v0  ;;  %45 = vst [vmem:[#allocation2] sm:$0x1] %v692_v1  ;;  %46 = vst [vmem:[#allocation3] sm:$0x1] %v692_v1  ;;  %v82_v3 = vld [vmem:[#allocation9 + $0x8] sm:$0xff]  ;;  %v83_v4 = vld [vmem:[#allocation9 + $0x10] sm:$0xff] }
  0x29   :  { %47 = vst [vmem:[#allocation4] sm:$0x1] %v692_v1  ;;  %48 = vst [vmem:[#allocation5] sm:$0x1] %v692_v1  ;;  %460 = vmatprep.mubr.msk.f32.mxu0 %vm693_vm0, %v692_v1  ;;  %495 = vmatprep.mubr.msk.f32.mxu1 %vm693_vm0, %v692_v1  ;;  %v756_v5 = vpack.c.bf16 %v82_v3, %v81_v2  ;;  %v84_v6 = vld [vmem:[#allocation9 + $0x18] sm:$0xff]  ;;  %v85_v8 = vld [vmem:[#allocation9 + $0x20] sm:$0xff] }
  0x2a   :  { %v760_v7 = vpack.c.bf16 %v84_v6, %v83_v4  ;;  %v86_v9 = vld [vmem:[#allocation9 + $0x28] sm:$0xff]  ;;  %v49_v10 = vld [vmem:[#allocation6] sm:$0x1]  ;;  %v50_v11 = vld [vmem:[%s811_s1] sm:$0x1]  ;;  %vm328_vm1 = vcmask 1040384  }
  0x2b   :  { %535 = vmatpush3.bf16.msra.mxu0 %v756_v5  ;;  %559 = vmatpush3.bf16.msra.mxu1 %v756_v5  ;;  %v52_v13 = vmul.f32 %v50_v11, %v49_v10  ;;  %617 = vlog2.f32 %v49_v10  ;;  %v769_v16 = vpack.c.bf16 %v86_v9, %v85_v8  ;;  %v67_v19 = vsub.f32 1.0, %v49_v10  ;;  %v87_v20 = vld [vmem:[#allocation9 + $0x30] sm:$0xff]  ;;  %v88_v21 = vld [vmem:[#allocation9 + $0x38] sm:$0xff]  ;;  %v89_v24 = vld [vmem:[#allocation9 + $0x40] sm:$0xff]  ;;  %s671_s21 = scalar_lea.hbm %s813_s3, 16 }
  0x2c   :  { %536 = vmatprep.subr.bf16.mxu0 %v691_v0  ;;  %560 = vmatprep.subr.bf16.mxu1 %v691_v0  ;;  %v543_v23 = vpack.c.bf16 %v88_v21, %v87_v20  ;;  %v90_v25 = vld [vmem:[#allocation9 + $0x48] sm:$0xff]  ;;  %v91_v28 = vld [vmem:[#allocation9 + $0x50] sm:$0xff]  ;;  %v92_v29 = vld [vmem:[#allocation9 + $0x58] sm:$0xff]  ;;  %p672_p2 = scmp.ne.s32.totalorder %s813_s3, %s671_s21  ;;  %p675_p3 = scmp.lt.u32.totalorder %s671_s21, %s813_s3 }
  0x2d   :  { %619 = vlog2.f32 %v67_v19  ;;  %v546_v26 = vpack.c.bf16 %v90_v25, %v89_v24  ;;  %v549_v32 = vpack.c.bf16 %v92_v29, %v91_v28  ;;  %v93_v33 = vld [vmem:[#allocation9 + $0x60] sm:$0xff]  ;;  %v94_v34 = vld [vmem:[#allocation9 + $0x68] sm:$0xff]  ;;  %v95_v39 = vld [vmem:[#allocation9 + $0x70] sm:$0xff] }
  0x2e   :  { %v552_v38 = vpack.c.bf16 %v94_v34, %v93_v33  ;;  %v96_v40 = vld [vmem:[#allocation9 + $0x78] sm:$0xff]  ;;  %p677_p4 = pnand %p675_p3, %p672_p2 }
  0x2f   :  { %v51_v12 = vld [vmem:[#allocation2] sm:$0x1]  ;;  %v56_v14 = vld [vmem:[#allocation3] sm:$0x1]  ;;  %538 = vmatpush3.bf16.msra.mxu0 %v760_v7  ;;  %562 = vmatpush3.bf16.msra.mxu1 %v760_v7  ;;  %v555_v43 = vpack.c.bf16 %v96_v40, %v95_v39 }
  0x30   :  { %v60_v15 = vld [vmem:[#allocation4] sm:$0x1]  ;;  %v58_v17 = vadd.f32 %v56_v14, %v49_v10  ;;  %539 = vmatprep.subr.bf16.mxu0 %v691_v0  ;;  %563 = vmatprep.subr.bf16.mxu1 %v691_v0  ;;  %v54_v22 = vadd.f32 %v52_v13, %v51_v12  ;;  %v71_v44 = vld [vmem:[#allocation5] sm:$0x1] }
  0x31   :  { %v62_v18 = vadd.f32 %v60_v15, %v50_v11 }
  0x32   :  { %59 = vst [vmem:[#allocation3] sm:$0x1] %v58_v17  ;;  %55 = vst [vmem:[#allocation2] sm:$0x1] %v54_v22 }
  0x33   :  { %63 = vst [vmem:[#allocation4] sm:$0x1] %v62_v18  ;;  %541 = vmatpush3.bf16.msra.mxu0 %v769_v16  ;;  %565 = vmatpush3.bf16.msra.mxu1 %v769_v16 }
  0x34   :  { %542 = vmatprep.subr.bf16.mxu0 %v691_v0  ;;  %566 = vmatprep.subr.bf16.mxu1 %v691_v0 }
  0x35   :  { %v618_v27 = vpop.eup %617 }
  0x36   :  { %v65_v30 = vmul.f32 0.6931472, %v618_v27 }
  0x37   :  { %544 = vmatpush3.bf16.msra.mxu0 %v543_v23  ;;  %568 = vmatpush3.bf16.msra.mxu1 %v543_v23  ;;  %v620_v31 = vpop.eup %619 }
  0x38   :  { %545 = vmatprep.subr.bf16.mxu0 %v691_v0  ;;  %569 = vmatprep.subr.bf16.mxu1 %v691_v0  ;;  %v66_v35 = vmax.f32 %v65_v30, -100.0  ;;  %v69_v36 = vmul.f32 0.6931472, %v620_v31 }
  0x39   :  { %v97_v47 = vld [vmem:[#allocation2] sm:$0x1]  ;;  %v168_v48 = vld [vmem:[#allocation3] sm:$0x1] }
  0x3a   :  { %v70_v37 = vmax.f32 %v69_v36, -100.0  ;;  %v239_v49 = vld [vmem:[#allocation4] sm:$0x1] }
  0x3b   :  { %547 = vmatpush3.bf16.msra.mxu0 %v546_v26  ;;  %571 = vmatpush3.bf16.msra.mxu1 %v546_v26 }
  0x3c   :  { %548 = vmatprep.subr.bf16.mxu0 %v691_v0  ;;  %572 = vmatprep.subr.bf16.mxu1 %v691_v0  ;;  %v72_v41 = vsub.f32 %v66_v35, %v70_v37 }
  0x3e   :  { %v73_v42 = vmul.f32 %v72_v41, %v50_v11 }
  0x3f   :  { %550 = vmatpush3.bf16.msra.mxu0 %v549_v32  ;;  %574 = vmatpush3.bf16.msra.mxu1 %v549_v32 }
  0x40   :  { %551 = vmatprep.subr.bf16.mxu0 %v691_v0  ;;  %575 = vmatprep.subr.bf16.mxu1 %v691_v0  ;;  %v74_v45 = vadd.f32 %v73_v42, %v70_v37 }
  0x42   :  { %v76_v46 = vadd.f32 %v74_v45, %v71_v44 }
  0x43   :  { %553 = vmatpush3.bf16.msra.mxu0 %v552_v38  ;;  %577 = vmatpush3.bf16.msra.mxu1 %v552_v38 }
  0x44   :  { %554 = vmatprep.subr.bf16.mxu0 %v691_v0  ;;  %578 = vmatprep.subr.bf16.mxu1 %v691_v0  ;;  %77 = vst [vmem:[#allocation5] sm:$0x1] %v76_v46 }
  0x47   :  { %556 = vmatpush3.bf16.msra.mxu0 %v555_v43  ;;  %580 = vmatpush3.bf16.msra.mxu1 %v555_v43 }
  0x48   :  { %581 = vmatprep.subr.bf16.mxu0 %v691_v0 }
  0x4a   :  { %461 = vmatmul.mubr.f32.vlgmr.msra.gmra.mrb[0].mxu0 %v97_v47  ;;  %496 = vmatmul.mubr.f32.vlgmr.msra.gmra.mrb[0].mxu1 %v168_v48 }
  0x4b   :  { %583 = vmatpush3.bf16.msra.mxu0 %v756_v5  ;;  %530 = vmatprep.mubr.msk.f32.mxu0 %vm693_vm0, %v692_v1  ;;  %v342_v9 = vld [vmem:[#allocation5] sm:$0x1] }
  0x4c   :  { %584 = vmatprep.subr.bf16.mxu0 %v691_v0  ;;  %v343_v11 = vsel %vm328_vm1, %v342_v9, 0.0 }
  0x4f   :  { %586 = vmatpush3.bf16.msra.mxu0 %v760_v7 }
  0x50   :  { %587 = vmatprep.subr.bf16.mxu0 %v691_v0 }
  0x53   :  { %589 = vmatpush3.bf16.msra.mxu0 %v769_v16 }
  0x54   :  { %590 = vmatprep.subr.bf16.mxu0 %v691_v0 }
  0x57   :  { %592 = vmatpush3.bf16.msra.mxu0 %v543_v23 }
  0x58   :  { %593 = vmatprep.subr.bf16.mxu0 %v691_v0 }
  0x5b   :  { %595 = vmatpush3.bf16.msra.mxu0 %v546_v26 }
  0x5c   :  { %596 = vmatprep.subr.bf16.mxu0 %v691_v0 }
  0x5f   :  { %598 = vmatpush3.bf16.msra.mxu0 %v549_v32 }
  0x60   :  { %599 = vmatprep.subr.bf16.mxu0 %v691_v0 }
  0x63   :  { %601 = vmatpush3.bf16.msra.mxu0 %v552_v38 }
  0x64   :  { %602 = vmatprep.subr.bf16.mxu0 %v691_v0 }
  0x67   :  { %604 = vmatpush3.bf16.msra.mxu0 %v555_v43 }
  0x6a   :  { %531 = vmatmul.mubr.f32.vlgmr.msra.gmra.mrb[2].mxu0 %v239_v49 }
 0x11d   :  { %v164_v50 = vpop.f32.mrb[0].mxu0  ;;  %v235_v51 = vpop.f32.mrb[0].mxu1 }
 0x11e   :  { %v311_v52 = vsub.f32 %v235_v51, %v164_v50  ;;  %v462_v53 = vpop.f32.mrb[1].mxu0  ;;  %v497_v54 = vpop.f32.mrb[1].mxu1 }
 0x120   :  { %v316_v55 = vadd.f32 %v311_v52, %v164_v50 }
 0x122   :  { %v317_v56 = vadd.f32 1e-07, %v316_v55 }
 0x124   :  { %621 = vrcp.f32 %v317_v56 }
 0x12e   :  { %v622_v57 = vpop.eup %621 }
 0x12f   :  { %v319_v58 = vmul.f32 %v622_v57, %v164_v50 }
 0x13d   :  { %v306_v59 = vpop.f32.mrb[2].mxu0 }
 0x13e   :  { %v310_v60 = vsub.f32 %v306_v59, %v164_v50  ;;  %v532_v61 = vpop.f32.mrb[3].mxu0 }
 0x140   :  { %v312_v62 = vadd.f32 %v310_v60, %v164_v50 }
 0x142   :  { %v313_v63 = vadd.f32 1e-07, %v312_v62 }
 0x144   :  { %623 = vrcp.f32 %v313_v63 }
 0x14e   :  { %v624_v0 = vpop.eup %623 }
 0x14f   :  { %v315_v1 = vmul.f32 %v624_v0, %v164_v50 }
 0x151   :  { %v320_v2 = vmul.f32 2.0, %v315_v1  ;;  %v322_v3 = vadd.f32 %v319_v58, %v315_v1 }
 0x153   :  { %v321_v4 = vmul.f32 %v320_v2, %v319_v58  ;;  %v323_v5 = vadd.f32 1e-07, %v322_v3 }
 0x155   :  { %625 = vrcp.f32 %v323_v5 }
 0x15f   :  { %v626_v6 = vpop.eup %625 }
 0x160   :  { %v325_v7 = vmul.f32 %v626_v6, %v321_v4 }
 0x162   :  { %vm326_vm2 = vcmp.ne.f32.partialorder %v325_v7, %v325_v7 }
 0x163   :  { %v327_v8 = vsel %vm326_vm2, 0.0, %v325_v7 }
 0x164   :  { %v329_v10 = vsel %vm328_vm1, %v327_v8, 0.0 }
 0x165   :  { %330 = vadd.xlane.f32.xlu0 %v329_v10 }
 0x169   :  { %344 = vadd.xlane.f32.xlu0 %v343_v11 }
 0x1f2   :  { %v331_v12 = vpop.xlane.xlu0 %330 }
 0x1f3   :  { %v332_v13 = vrot.slane %v331_v12, 4 }
 0x1f5   :  { %v333_v14 = vadd.f32 %v332_v13, %v331_v12 }
 0x1f6   :  { %v345_v15 = vpop.xlane.xlu0 %344 }
 0x1f7   :  { %v334_v16 = vrot.slane %v333_v14, 2  ;;  %v346_v17 = vrot.slane %v345_v15, 4 }
 0x1f9   :  { %v347_v18 = vadd.f32 %v346_v17, %v345_v15  ;;  %v335_v19 = vadd.f32 %v334_v16, %v333_v14 }
 0x1fb   :  { %v348_v20 = vrot.slane %v347_v18, 2  ;;  %v336_v21 = vrot.slane %v335_v19, 1 }
 0x1fd   :  { %v349_v22 = vadd.f32 %v348_v20, %v347_v18  ;;  %v337_v23 = vadd.f32 %v336_v21, %v335_v19 }
 0x1ff   :  { %605 = vpush %v337_v23  ;;  %v350_v24 = vrot.slane %v349_v22, 1 }
 0x201   :  { %v351_v25 = vadd.f32 %v350_v24, %v349_v22 }
 0x203   :  { %607 = vpush %v351_v25 }
 0x230   :  { %s606_s1 = spop %605 }
 0x231   :  { %s341_s13 = smul.f32 0.0078125, %s606_s1 }
 0x233   :  { %s357_s16 = ssub.f32 1.0, %s341_s13 }
 0x234   :  { %s608_s12 = spop %607 }
 0x235   :  { %s353_s14 = ssub.f32 0.0, %s608_s12 }
 0x237   :  { %s356_s15 = smul.f32 0.0078125, %s353_s14 }
 0x239   :  { %s358_s17 = smul.f32 0.01, %s356_s15 }
 0x23b   :  { %s359_s18 = sadd.f32 %s358_s17, %s357_s16 }
 0x23d   :  { %361 = sst [smem:[#allocation11]] %s359_s18 }
 0x23e   :  { %680 = shalt.err (!%p677_p4)
}
 0x23f   :  { %s694_s26 = smov [#allocation11]  }
 0x240   :  { %369 = dma.smem_to_hbm %s694_s26, 16, %s813_s3, [#allocation8]  }
 0x241   :  { %685 = dma.done.wait [#allocation8], 16  }
 0x242   :  { %686 = vsyncadd [#allocation8], 4294967280 }
 0x243   :  { %373 = sfence }
 0x244   :  { %374 = vsyncpa [#allocation7], 1 }
 0x245   :  { %375 = vsyncpa [#allocation10], 1 }
 0x246   :  { %376 = vsyncpa [#allocation8], 1 }

</bundles_post_ra>
